<compile_context>
chip_gen: v5e
topology: v5e:2x2
jax: 0.10.0
libtpu: 0.0.40
codegen_flags: <defaults>
</compile_context>

<pallas_src>
import functools

import jax
import jax.numpy as jnp
from jax.experimental import pallas as pl
from jax.experimental.pallas import tpu as pltpu


def _round_up(x: int, m: int) -> int:
    return ((x + m - 1) // m) * m


def _cdiv(a: int, b: int) -> int:
    return (a + b - 1) // b


def _pick_tile(size: int, candidates) -> int:
    # Largest candidate that evenly divides `size` (size is already a multiple of 128,
    # so the final 128 candidate always divides).
    for c in candidates:
        if c <= size and size % c == 0:
            return c
    return candidates[-1]


# Lane-dim (N) tiles: multiples of 256 preferred (v6e/v7x MXU is 2x256x256); no 384.
_N_TILE_CANDIDATES = (512, 256, 128)
# Reduction-dim (K) tiles: bigger -> fewer accumulation steps; all 256-aligned or 128.
_K_TILE_CANDIDATES = (1024, 768, 512, 256, 128)


def _vmem_budget_bytes() -> int:
    """~Half of physical VMEM: 64 MiB on v5e/v6e (128 MiB), 32 MiB on v7x (64 MiB)."""
    try:
        cap = int(pltpu.get_tpu_info().vmem_capacity_bytes)
    except Exception:
        cap = 64 * 1024 * 1024  # conservative fallback: v7x physical per-core VMEM
    return max(16 * 1024 * 1024, cap // 2)


def _epilogue(acc_f32, b_ref, activate_function):
    out = acc_f32 + b_ref[...].astype(jnp.float32)
    if activate_function == "relu":
        out = jnp.maximum(out, 0.0)
    elif activate_function == "leaky_relu":
        out = jnp.where(out >= 0.0, out, 0.01 * out)  # torch.nn.LeakyReLU default slope
    elif activate_function == "tanh":
        out = jnp.tanh(out)
    return out


def _mlp_kernel_single_k(x_ref, w_ref, b_ref, o_ref, *, activate_function):
    # Whole K in one tile: no scratch, no accumulator round-trip.
    # x_ref: (tm, K)  w_ref: (K, tn)  b_ref: (1, tn)  o_ref: (tm, tn)
    acc = jnp.dot(x_ref[...], w_ref[...], preferred_element_type=jnp.float32)
    o_ref[...] = _epilogue(acc, b_ref, activate_function).astype(o_ref.dtype)


def _mlp_kernel_acc(x_ref, w_ref, b_ref, o_ref, acc_ref, *, activate_function):
    # K-tiled reduction with f32 VMEM accumulator.
    # x_ref: (tm, tk)  w_ref: (tk, tn)  b_ref: (1, tn)  o_ref: (tm, tn)  acc_ref: (tm, tn) f32
    k = pl.program_id(2)
    partial = jnp.dot(x_ref[...], w_ref[...], preferred_element_type=jnp.float32)

    @pl.when(k == 0)
    def _():
        acc_ref[...] = partial          # write directly: no zero-fill + reload

    @pl.when(k > 0)
    def _():
        acc_ref[...] += partial

    @pl.when(k == pl.num_programs(2) - 1)
    def _():
        o_ref[...] = _epilogue(acc_ref[...], b_ref, activate_function).astype(o_ref.dtype)


def mlp_block(x, weight, bias, activate_function="relu", drop_out=0.0, *,
              use_bf16_compute=False, tile_m=None, tile_n=None, tile_k=None,
              vmem_limit_bytes=None):
    """Pallas implementation of MLP_Block.forward.

    x:      [..., in_channel]            (any leading dims, channels-last)
    weight: [out_channel, in_channel]    (PyTorch nn.Linear convention)
    bias:   [out_channel]

    use_bf16_compute: when inputs are f32, run the matmul in bf16 (f32 accumulate,
    f32 bias/activation epilogue) for 2-3x MXU throughput and half the DMA bytes.
    """
    # TODO(synk): Dropout (training mode, drop_out > 0) not implemented; eval / drop_out=0 is a no-op.
    out_channel, in_channel = weight.shape
    lead_shape = x.shape[:-1]
    out_dtype = x.dtype
    x2d = x.reshape(-1, in_channel)
    M = x2d.shape[0]

    # One-time HBM-side transpose to (K, N): amortized over all tiles / all calls.
    w_t = weight.T

    compute_in_bf16 = bool(use_bf16_compute) and jnp.dtype(x.dtype) == jnp.dtype(jnp.float32)
    if compute_in_bf16:
        x2d = x2d.astype(jnp.bfloat16)
        w_t = w_t.astype(jnp.bfloat16)

    in_itemsize = jnp.dtype(x2d.dtype).itemsize
    out_itemsize = jnp.dtype(out_dtype).itemsize
    m_align = 16 if in_itemsize == 2 else 8   # bf16 packs 2 rows/sublane

    budget = _vmem_budget_bytes()

    # ---- tile selection ----
    K_pad = _round_up(in_channel, 128)
    N_pad = _round_up(out_channel, 128)
    if tile_k is None:
        tile_k = _pick_tile(K_pad, _K_TILE_CANDIDATES)
    if tile_n is None:
        tile_n = _pick_tile(N_pad, _N_TILE_CANDIDATES)

    m_cap = 512 if budget >= 24 * 1024 * 1024 else 256
    if tile_m is None:
        n_m_tiles = max(1, _cdiv(M, m_cap))
        # v7x megacore: if both parallel axes would collapse to a single tile and the
        # problem is big enough, split M so both TensorCores get work.
        if n_m_tiles == 1 and N_pad == tile_n and M >= 256:
            n_m_tiles = 2
        tile_m = _round_up(_cdiv(M, n_m_tiles), m_align)
    M_pad = _round_up(M, tile_m)

    # ---- VMEM working-set guard (double-buffered inputs/outputs + f32 acc) ----
    def _working_set(tm, tn, tk):
        return (2 * tm * tk * in_itemsize      # x tiles
                + 2 * tk * tn * in_itemsize    # weight tiles
                + 2 * tn * 4                   # bias tiles
                + 2 * tm * tn * out_itemsize   # output tiles
                + tm * tn * 4)                 # f32 accumulator

    if _working_set(tile_m, tile_n, tile_k) > budget:
        for tk_c in _K_TILE_CANDIDATES:
            if tk_c <= tile_k and K_pad % tk_c == 0 and _working_set(tile_m, tile_n, tk_c) <= budget:
                tile_k = tk_c
                break
    while _working_set(tile_m, tile_n, tile_k) > budget and tile_n > 128:
        tile_n //= 2
    while _working_set(tile_m, tile_n, tile_k) > budget and tile_m > m_align:
        tile_m = max(m_align, _round_up(tile_m // 2, m_align))
        M_pad = _round_up(M, tile_m)

    if vmem_limit_bytes is None:
        vmem_limit_bytes = budget

    # ---- pad to tile multiples (zero pads contribute 0 to the dot; sliced off after) ----
    x_p = x2d
    if (M_pad, K_pad) != x2d.shape:
        x_p = jnp.pad(x2d, ((0, M_pad - M), (0, K_pad - in_channel)))
    w_p = w_t
    if (K_pad, N_pad) != w_t.shape:
        w_p = jnp.pad(w_t, ((0, K_pad - in_channel), (0, N_pad - out_channel)))
    b_p = bias.reshape(1, out_channel)
    if N_pad != out_channel:
        b_p = jnp.pad(b_p, ((0, 0), (0, N_pad - out_channel)))

    grid_m = M_pad // tile_m
    grid_n = N_pad // tile_n
    grid_k = K_pad // tile_k

    cost = pl.CostEstimate(
        flops=2 * M_pad * N_pad * K_pad,
        transcendentals=(M_pad * N_pad) if activate_function == "tanh" else 0,
        bytes_accessed=(x_p.size * jnp.dtype(x_p.dtype).itemsize
                        + w_p.size * jnp.dtype(w_p.dtype).itemsize
                        + b_p.size * jnp.dtype(b_p.dtype).itemsize
                        + M_pad * N_pad * out_itemsize),
    )

    if grid_k == 1:
        kernel = functools.partial(_mlp_kernel_single_k, activate_function=activate_function)
        grid = (grid_m, grid_n)
        in_specs = [
            pl.BlockSpec((tile_m, tile_k), lambda i, j: (i, 0)),   # x tile
            pl.BlockSpec((tile_k, tile_n), lambda i, j: (0, j)),   # W^T tile (K, N)
            pl.BlockSpec((1, tile_n), lambda i, j: (0, j)),        # bias tile
        ]
        out_specs = pl.BlockSpec((tile_m, tile_n), lambda i, j: (i, j))
        scratch_shapes = []
        dim_semantics = ("parallel", "parallel")
    else:
        kernel = functools.partial(_mlp_kernel_acc, activate_function=activate_function)
        grid = (grid_m, grid_n, grid_k)
        in_specs = [
            pl.BlockSpec((tile_m, tile_k), lambda i, j, k: (i, k)),   # x tile
            pl.BlockSpec((tile_k, tile_n), lambda i, j, k: (k, j)),   # W^T tile (K, N)
            pl.BlockSpec((1, tile_n), lambda i, j, k: (0, j)),        # bias tile
        ]
        out_specs = pl.BlockSpec((tile_m, tile_n), lambda i, j, k: (i, j))
        scratch_shapes = [pltpu.VMEM((tile_m, tile_n), jnp.float32)]  # f32 accumulator
        dim_semantics = ("parallel", "parallel", "arbitrary")

    out2d = pl.pallas_call(
        kernel,
        out_shape=jax.ShapeDtypeStruct((M_pad, N_pad), out_dtype),
        grid_spec=pltpu.PrefetchScalarGridSpec(
            num_scalar_prefetch=0,
            grid=grid,
            in_specs=in_specs,
            out_specs=out_specs,
            scratch_shapes=scratch_shapes,
        ),
        compiler_params=pltpu.CompilerParams(
            dimension_semantics=dim_semantics,
            vmem_limit_bytes=int(vmem_limit_bytes),
        ),
        cost_estimate=cost,
    )(x_p, w_p, b_p)

    out2d = out2d[:M, :out_channel]
    return out2d.reshape(*lead_shape, out_channel)


if __name__ == "__main__":
    # Small shapes consistent with a ViT token MLP: batch=2, seq=8, in=32, out=64.
    batch, seq = 2, 8
    in_channel, out_channel = 32, 64

    key = jax.random.PRNGKey(0)
    kx, kw, kb = jax.random.split(key, 3)

    x = jax.random.normal(kx, (batch, seq, in_channel), dtype=jnp.float32)
    bound = 1.0 / (in_channel ** 0.5)
    weight = jax.random.uniform(kw, (out_channel, in_channel), jnp.float32, -bound, bound)
    bias = jax.random.uniform(kb, (out_channel,), jnp.float32, -bound, bound)

    # f32 path, relu
    y = mlp_block(x, weight, bias, activate_function="relu", drop_out=0.0)
    y = jax.block_until_ready(y)
    y_ref = jnp.maximum(x @ weight.T + bias, 0.0)
    assert y.shape == (batch, seq, out_channel)
    assert jnp.allclose(y, y_ref, atol=1e-5, rtol=1e-5)

    # f32 path, tanh (exercises the EUP epilogue branch)
    yt = jax.block_until_ready(mlp_block(x, weight, bias, activate_function="tanh"))
    assert jnp.allclose(yt, jnp.tanh(x @ weight.T + bias), atol=1e-5, rtol=1e-5)

    # ViT-realistic shape (non-divisible M -> near-equal M tiling, single-K fused path).
    xb = jax.random.normal(kx, (4, 197, 768), dtype=jnp.float32)
    wb = jax.random.normal(kw, (3072, 768), dtype=jnp.float32) * 0.02
    bb = jax.random.normal(kb, (3072,), dtype=jnp.float32) * 0.02
    yb_ref = jnp.maximum(xb @ wb.T + bb, 0.0)

    yb = jax.block_until_ready(mlp_block(xb, wb, bb, activate_function="relu"))
    assert jnp.allclose(yb, yb_ref, atol=2e-3, rtol=2e-3)

    # bf16 MXU path (f32 accumulate + epilogue) on the same shape, looser tolerance.
    yb16 = jax.block_until_ready(
        mlp_block(xb, wb, bb, activate_function="relu", use_bf16_compute=True))
    assert yb16.dtype == xb.dtype
    assert jnp.allclose(yb16, yb_ref, atol=3e-2, rtol=3e-2)

    print("KERNEL_OK")
</pallas_src>

<mosaic_0001>
module attributes {stable_mosaic.version = 11 : i64} {
  func.func @_mlp_kernel_single_k(%arg0: i32, %arg1: i32, %arg2: memref<16x128xf32, #tpu.memory_space<vmem>>, %arg3: memref<128x128xf32, #tpu.memory_space<vmem>>, %arg4: memref<1x128xf32, #tpu.memory_space<vmem>>, %arg5: memref<16x128xf32, #tpu.memory_space<vmem>>) attributes {dimension_semantics = [#tpu.dimension_semantics<parallel>, #tpu.dimension_semantics<parallel>], iteration_bounds = array<i64: 1, 1>, scalar_prefetch = 0 : i64, scratch_operands = 0 : i64, tpu.core_type = #tpu.core_type<tc>, window_params = [{transform_indices = @transform_0, window_bounds = array<i64: 16, 128>}, {transform_indices = @transform_1, window_bounds = array<i64: 128, 128>}, {transform_indices = @transform_2, window_bounds = array<i64: 1, 128>}, {transform_indices = @transform_3, window_bounds = array<i64: 16, 128>}]} {
    %c0 = arith.constant 0 : index
    %c0_0 = arith.constant 0 : index
    %0 = vector.load %arg2[%c0, %c0_0] : memref<16x128xf32, #tpu.memory_space<vmem>>, vector<16x128xf32>
    %c0_1 = arith.constant 0 : index
    %c0_2 = arith.constant 0 : index
    %1 = vector.load %arg3[%c0_1, %c0_2] : memref<128x128xf32, #tpu.memory_space<vmem>>, vector<128x128xf32>
    %cst = arith.constant dense<0.000000e+00> : vector<16x128xf32>
    %2 = tpu.matmul %0, %1, %cst {dimension_numbers = #tpu.dot_dimension_numbers<[1], [0], [0], [1], [0, 0, 1, 1], [], []>} : vector<16x128xf32>, vector<128x128xf32>, vector<16x128xf32> -> vector<16x128xf32>
    %c0_3 = arith.constant 0 : index
    %c0_4 = arith.constant 0 : index
    %3 = vector.load %arg4[%c0_3, %c0_4] : memref<1x128xf32, #tpu.memory_space<vmem>>, vector<1x128xf32>
    %4 = vector.broadcast %3 : vector<1x128xf32> to vector<16x128xf32>
    %5 = arith.addf %2, %4 : vector<16x128xf32>
    %cst_5 = arith.constant 0.000000e+00 : f32
    %6 = vector.broadcast %cst_5 : f32 to vector<16x128xf32>
    %7 = arith.maximumf %5, %6 : vector<16x128xf32>
    %c0_6 = arith.constant 0 : index
    %c0_7 = arith.constant 0 : index
    %8 = vector.load %arg5[%c0_6, %c0_7] : memref<16x128xf32, #tpu.memory_space<vmem>>, vector<16x128xf32>
    tpu.vector_store %arg5[%c0_6, %c0_7], %7 {strides = array<i32>} : memref<16x128xf32, #tpu.memory_space<vmem>>, vector<16x128xf32>,
    return
  }
  func.func @transform_0(%arg0: i32, %arg1: i32) -> (i32, i32) {
    %c0_i32 = arith.constant 0 : i32
    %c0_i32_0 = arith.constant 0 : i32
    return %arg0, %c0_i32 : i32, i32
  }
  func.func @transform_1(%arg0: i32, %arg1: i32) -> (i32, i32) {
    %c0_i32 = arith.constant 0 : i32
    %c0_i32_0 = arith.constant 0 : i32
    return %c0_i32, %arg1 : i32, i32
  }
  func.func @transform_2(%arg0: i32, %arg1: i32) -> (i32, i32) {
    %c0_i32 = arith.constant 0 : i32
    %c0_i32_0 = arith.constant 0 : i32
    return %c0_i32, %arg1 : i32, i32
  }
  func.func @transform_3(%arg0: i32, %arg1: i32) -> (i32, i32) {
    %c0_i32 = arith.constant 0 : i32
    return %arg0, %arg1 : i32, i32
  }
}

</mosaic_0001>

<bundles_post_ra>
// kernel: tpu_custom_call.1
= control target key start
LH: loop header
LB: loop body
LE: loop exit
PB: predicated region body
PF: predicated region fallthrough
CT: control target
= control target key end

     0   :  { %8 = vsyncpa [#allocation3], 0  ;;  %s262_s0 = inlined_call_operand.hbm [shape: f32[16,128], index: 0, kind: input, shape index: {}]   ;;  %s263_s1 = inlined_call_operand.hbm [shape: f32[128,128], index: 1, kind: input, shape index: {}]   ;;  %s264_s2 = inlined_call_operand.vmem [shape: f32[1,128], index: 2, kind: input, shape index: {}]   ;;  %s265_s3 = inlined_call_operand.hbm [shape: f32[16,128], index: 3, kind: output, shape index: {}]  }
   0x1   :  { %9 = vsyncpa [#allocation6], 0 }
   0x2   :  { %10 = vsyncpa [#allocation4], 0  ;;  %s15_s14 = sshll.u32 %s262_s0, 4  ;;  %s216_s15 = smov [#allocation2]   ;;  %s16_s14 = int_to_ptr.hbm [resolvable:$true] %s15_s14 }
   0x3   :  { %s17_s16 = sshll.u32 %s216_s15, 4  ;;  %s28_s19 = sshll.u32 %s263_s1, 4  ;;  %s18_s16 = int_to_ptr.vmem [resolvable:$true] %s17_s16  ;;  %s29_s19 = int_to_ptr.hbm [resolvable:$true] %s28_s19 }
   0x4   :  { %s217_s20 = smov 128   ;;  %s218_s21 = smov 8  }
   0x5   :  { %23 = dma.hbm_to_vmem [thread:$0]  %s16_s14, 256, %s18_s16, [#allocation3], %s217_s20, %s217_s20, %s218_s21  }
   0x6   :  { %s219_s22 = smov [#allocation5]  }
   0x7   :  { %s30_s23 = sshll.u32 %s219_s22, 4  ;;  %s31_s23 = int_to_ptr.vmem [resolvable:$true] %s30_s23 }
   0x8   :  { %36 = dma.hbm_to_vmem [thread:$0]  %s29_s19, 2048, %s31_s23, [#allocation6], %s217_s20, %s217_s20, %s218_s21  }
   0x9   :  { %210 = dma.done.wait [#allocation3], 256  }
   0xa   :  { %211 = vsyncadd [#allocation3], 4294967040 }
   0xb   :  { %212 = dma.done.wait [#allocation6], 2048  }
   0xc   :  { %213 = vsyncadd [#allocation6], 4294965248  ;;  %v64_v0 = vld [vmem:[#allocation5 + $0x78] sm:$0xff]  ;;  %v63_v1 = vld [vmem:[#allocation5 + $0x70] sm:$0xff]  ;;  %s220_s24 = smov [#allocation7]   ;;  %s102_s28 = sshll.u32 %s265_s3, 4  ;;  %s103_s28 = int_to_ptr.hbm [resolvable:$true] %s102_s28 }
   0xd   :  { %69 = vmatpush.msra.mxu0 %v64_v0  ;;  %116 = vmatpush.msra.mxu1 %v64_v0  ;;  %v62_v2 = vld [vmem:[#allocation5 + $0x68] sm:$0xff]  ;;  %v61_v3 = vld [vmem:[#allocation5 + $0x60] sm:$0xff]  ;;  %v60_v4 = vld [vmem:[#allocation5 + $0x58] sm:$0xff]  ;;  %s100_s25 = sshll.u32 %s220_s24, 4  ;;  %s101_s25 = int_to_ptr.vmem [resolvable:$true] %s100_s25 }
   0xe   :  { %v59_v5 = vld [vmem:[#allocation5 + $0x50] sm:$0xff]  ;;  %v58_v6 = vld [vmem:[#allocation5 + $0x48] sm:$0xff]  ;;  %v57_v7 = vld [vmem:[#allocation5 + $0x40] sm:$0xff] }
   0xf   :  { %70 = vmatpush.msra.mxu0 %v63_v1  ;;  %117 = vmatpush.msra.mxu1 %v63_v1  ;;  %v56_v8 = vld [vmem:[#allocation5 + $0x38] sm:$0xff]  ;;  %v55_v9 = vld [vmem:[#allocation5 + $0x30] sm:$0xff]  ;;  %v54_v10 = vld [vmem:[#allocation5 + $0x28] sm:$0xff] }
  0x10   :  { %v53_v11 = vld [vmem:[#allocation5 + $0x20] sm:$0xff]  ;;  %v52_v12 = vld [vmem:[#allocation5 + $0x18] sm:$0xff]  ;;  %v51_v13 = vld [vmem:[#allocation5 + $0x10] sm:$0xff] }
  0x11   :  { %71 = vmatpush.msra.mxu0 %v62_v2  ;;  %118 = vmatpush.msra.mxu1 %v62_v2  ;;  %v50_v14 = vld [vmem:[#allocation5 + $0x8] sm:$0xff]  ;;  %v49_v15 = vld [vmem:[#allocation5] sm:$0xff]  ;;  %v47_v16 = vld [vmem:[#allocation2] sm:$0xff] }
  0x12   :  { %v48_v17 = vld [vmem:[#allocation2 + $0x8] sm:$0xff]  ;;  %v137_v18 = vld [vmem:[%s264_s2] ss:$0 sm:$0xff] }
  0x13   :  { %72 = vmatpush.msra.mxu0 %v61_v3  ;;  %119 = vmatpush.msra.mxu1 %v61_v3 }
  0x15   :  { %73 = vmatpush.msra.mxu0 %v60_v4  ;;  %120 = vmatpush.msra.mxu1 %v60_v4 }
  0x17   :  { %74 = vmatpush.msra.mxu0 %v59_v5  ;;  %121 = vmatpush.msra.mxu1 %v59_v5 }
  0x19   :  { %75 = vmatpush.msra.mxu0 %v58_v6  ;;  %122 = vmatpush.msra.mxu1 %v58_v6 }
  0x1b   :  { %76 = vmatpush.msra.mxu0 %v57_v7  ;;  %123 = vmatpush.msra.mxu1 %v57_v7 }
  0x1d   :  { %77 = vmatpush.msra.mxu0 %v56_v8  ;;  %124 = vmatpush.msra.mxu1 %v56_v8 }
  0x1f   :  { %78 = vmatpush.msra.mxu0 %v55_v9  ;;  %125 = vmatpush.msra.mxu1 %v55_v9 }
  0x21   :  { %79 = vmatpush.msra.mxu0 %v54_v10  ;;  %126 = vmatpush.msra.mxu1 %v54_v10 }
  0x23   :  { %80 = vmatpush.msra.mxu0 %v53_v11  ;;  %127 = vmatpush.msra.mxu1 %v53_v11 }
  0x25   :  { %81 = vmatpush.msra.mxu0 %v52_v12  ;;  %128 = vmatpush.msra.mxu1 %v52_v12 }
  0x27   :  { %82 = vmatpush.msra.mxu0 %v51_v13  ;;  %129 = vmatpush.msra.mxu1 %v51_v13 }
  0x29   :  { %83 = vmatpush.msra.mxu0 %v50_v14  ;;  %130 = vmatpush.msra.mxu1 %v50_v14 }
  0x2b   :  { %84 = vmatpush.msra.mxu0 %v49_v15  ;;  %131 = vmatpush.msra.mxu1 %v49_v15 }
  0x2c   :  { %85 = vmatmul.f32.vlgmr.msra.gmra.mxu0 %v47_v16  ;;  %88 = vmatmul.f32.vlgmr.msra.gmra.mxu1 %v48_v17 }
  0xa9   :  { %v86_v19 = vpop.f32.mrf.mxu0  ;;  %v89_v20 = vpop.f32.mrf.mxu1 }
  0xaa   :  { %v87_v21 = vadd.f32 %v137_v18, %v86_v19  ;;  %v90_v22 = vadd.f32 %v137_v18, %v89_v20 }
  0xac   :  { %v92_v23 = vmax.f32 %v87_v21, 0.0  ;;  %v93_v24 = vmax.f32 %v90_v22, 0.0 }
  0xae   :  { %94 = vst [vmem:[#allocation7] sm:$0xff] %v92_v23 }
  0xaf   :  { %95 = vst [vmem:[#allocation7 + $0x8] sm:$0xff] %v93_v24 }
  0xb0   :  { %108 = dma.vmem_to_hbm [thread:$0]  %s101_s25, 256, %s103_s28, [#allocation4], %s217_s20, %s217_s20, %s218_s21  }
  0xb1   :  { %214 = dma.done.wait [#allocation4], 256  }
  0xb2   :  { %215 = vsyncadd [#allocation4], 4294967040 }
  0xb3   :  { %113 = vsyncpa [#allocation3], 1 }
  0xb4   :  { %114 = vsyncpa [#allocation6], 1 }
  0xb5   :  { %115 = vsyncpa [#allocation4], 1 }

</bundles_post_ra>
